<compile_context>
chip_gen: v7x
topology: tpu7x:2x2x1
jax: 0.10.0
libtpu: 0.0.40
codegen_flags: <defaults>
</compile_context>

<pallas_src>
import functools

import jax
import jax.numpy as jnp
from jax.experimental import pallas as pl
from jax.experimental.pallas import tpu as pltpu


# ----------------------------------------------------------------------------
# Fused Pallas kernel
# ----------------------------------------------------------------------------

def ast_autoencoder_kernel(x_ref, adj_ref, pfold_ref, m_ref, w_ref, b_ref, out_ref):
    f32, bf16 = jnp.float32, jnp.bfloat16

    a_enc = adj_ref[0]                      # (N, N) bf16
    a_dec = adj_ref[1]                      # (N, N) bf16

    def gcn(h, a, wi, bi, relu):
        # GCNConv:  A_hat @ (H W) + b   (bf16 MXU operands, f32 accumulation)
        hw = jnp.dot(h.astype(bf16), w_ref[wi], preferred_element_type=f32)
        o = jnp.dot(a, hw.astype(bf16), preferred_element_type=f32) + b_ref[bi:bi + 1, :]
        return jnp.maximum(o, 0.0) if relu else o

    # ---- encoder: RubyComplexityGNN(return_embedding=True), dropout=eval ----
    h = gcn(x_ref[...], a_enc, 0, 0, relu=True)
    h = gcn(h, a_enc, 1, 1, relu=True)
    # encoder conv3 fused with global_mean_pool:
    #   pool @ (A_enc @ (h W3) + b3) == (pool @ A_enc) @ (h W3) + b3
    hw = jnp.dot(h.astype(bf16), w_ref[2], preferred_element_type=f32)
    emb = jnp.dot(pfold_ref[...], hw.astype(bf16),
                  preferred_element_type=f32) + b_ref[2:3, :]        # (B, H) f32

    # ---- decoder: ASTDecoder ------------------------------------------------
    # Folded embedding_transform + expand + first decoder GCN:
    #   relu( M @ (emb @ (Wtf Wd1) + btf Wd1) + bd1 ),   M = A_dec @ expand
    z = jnp.dot(emb.astype(bf16), w_ref[3], preferred_element_type=f32) + b_ref[3:4, :]
    m = m_ref[...]                                                   # (N, B) f32, VPU path
    nf = m[:, 0:1] * z[0:1, :]
    for b in range(1, z.shape[0]):          # B is static -> unrolled VPU broadcast-sum
        nf = nf + m[:, b:b + 1] * z[b:b + 1, :]
    nf = jnp.maximum(nf + b_ref[4:5, :], 0.0)                        # decoder conv 1

    nf = gcn(nf, a_dec, 4, 5, relu=True)                             # decoder conv 2
    nf = gcn(nf, a_dec, 5, 6, relu=True)                             # decoder conv 3

    # node_output head (weights / bias zero-padded to 64 output columns)
    node = jnp.dot(nf.astype(bf16), w_ref[6], preferred_element_type=f32) + b_ref[7:8, :]

    # ---- single lane-dense (8 + N, 128) f32 output slab, one unmasked store --
    B, H = emb.shape
    row_pad = jnp.zeros((8 - B, H), f32)
    body = jnp.concatenate([emb, row_pad, node], axis=0)             # (8+N, 64)
    col_pad = jnp.zeros((body.shape[0], 128 - H), f32)
    out_ref[...] = jnp.concatenate([body, col_pad], axis=1)          # (8+N, 128)


# ----------------------------------------------------------------------------
# Wrapper
# ----------------------------------------------------------------------------

@functools.partial(jax.jit, static_argnames=("num_graphs", "num_nodes", "hidden", "out_dim"))
def ast_autoencoder_forward(x_pad, adj_slab, p_fold, m_fold, w_slab, b_slab, *,
                            num_graphs, num_nodes, hidden, out_dim):
    """Returns (embedding [B, hidden], node_features [B, num_nodes, out_dim])."""
    n_dec = num_graphs * num_nodes
    vmem = pl.BlockSpec(memory_space=pltpu.MemorySpace.VMEM)
    slab = pl.pallas_call(
        ast_autoencoder_kernel,
        out_shape=jax.ShapeDtypeStruct((8 + n_dec, 128), jnp.float32),
        in_specs=[vmem] * 6,
        out_specs=vmem,
    )(x_pad, adj_slab, p_fold, m_fold, w_slab, b_slab)

    emb = slab[:num_graphs, :hidden]
    node = slab[8:8 + n_dec, :out_dim].reshape(num_graphs, num_nodes, out_dim)
    return emb, node


# ----------------------------------------------------------------------------
# Parameters (f32 so constant folding is exact), packing, graph construction
# ----------------------------------------------------------------------------

def init_params(key, input_dim=16, hidden_dim=64, node_output_dim=16):
    ks = jax.random.split(key, 16)
    s = 0.1

    def p(k, shape):
        return (s * jax.random.normal(k, shape)).astype(jnp.float32)

    return {
        # encoder: RubyComplexityGNN, 3x GCNConv
        "enc_w1": p(ks[0], (input_dim, hidden_dim)),  "enc_b1": p(ks[1], (1, hidden_dim)),
        "enc_w2": p(ks[2], (hidden_dim, hidden_dim)), "enc_b2": p(ks[3], (1, hidden_dim)),
        "enc_w3": p(ks[4], (hidden_dim, hidden_dim)), "enc_b3": p(ks[5], (1, hidden_dim)),
        # decoder: ASTDecoder
        "emb_tf_w": p(ks[6], (hidden_dim, hidden_dim)),
        "emb_tf_b": p(ks[7], (1, hidden_dim)),
        "dec_w1": p(ks[8], (hidden_dim, hidden_dim)),  "dec_b1": p(ks[9], (1, hidden_dim)),
        "dec_w2": p(ks[10], (hidden_dim, hidden_dim)), "dec_b2": p(ks[11], (1, hidden_dim)),
        "dec_w3": p(ks[12], (hidden_dim, hidden_dim)), "dec_b3": p(ks[13], (1, hidden_dim)),
        "node_out_w": p(ks[14], (hidden_dim, node_output_dim)),
        "node_out_b": p(ks[15], (1, node_output_dim)),
    }


def pack_operands(params, x, a_enc, pool, a_dec, expand):
    """Host-side constant folding (f32) + packing into a few bf16/f32 slabs."""
    f32, bf16 = jnp.float32, jnp.bfloat16
    H = params["enc_w2"].shape[0]
    in_dim = params["enc_w1"].shape[0]
    out_dim = params["node_out_w"].shape[1]

    # --- constant folding in f32 ---
    w_fold = params["emb_tf_w"] @ params["dec_w1"]            # (H, H)
    b_fold = params["emb_tf_b"] @ params["dec_w1"]            # (1, H)
    p_fold = pool @ a_enc                                     # (B, N_enc)
    m_fold = a_dec @ expand                                   # (N_dec, B)

    # --- zero-pad odd-shaped operands into uniform (H, H) / (1, H) slots ---
    enc_w1_pad = jnp.zeros((H, H), f32).at[:in_dim, :].set(params["enc_w1"])
    ow_pad = jnp.zeros((H, H), f32).at[:, :out_dim].set(params["node_out_w"])
    ob_pad = jnp.zeros((1, H), f32).at[:, :out_dim].set(params["node_out_b"])
    x_pad = jnp.zeros((x.shape[0], H), f32).at[:, :in_dim].set(x)

    w_slab = jnp.stack([enc_w1_pad, params["enc_w2"], params["enc_w3"], w_fold,
                        params["dec_w2"], params["dec_w3"], ow_pad]).astype(bf16)
    b_slab = jnp.concatenate([params["enc_b1"], params["enc_b2"], params["enc_b3"],
                              b_fold, params["dec_b1"], params["dec_b2"],
                              params["dec_b3"], ob_pad], axis=0).astype(f32)
    assert a_enc.shape == a_dec.shape
    adj_slab = jnp.stack([a_enc, a_dec]).astype(bf16)

    return (x_pad.astype(bf16), adj_slab, p_fold.astype(bf16),
            m_fold.astype(f32), w_slab, b_slab)


def _sym_norm(A):
    """A_hat = D^-1/2 (A + I) D^-1/2  (PyG GCNConv normalization), in f32."""
    A_tilde = A + jnp.eye(A.shape[0], dtype=A.dtype)
    d = jax.lax.rsqrt(A_tilde.sum(axis=1))
    return d[:, None] * A_tilde * d[None, :]


def build_encoder_graph(key, num_graphs=2, nodes_per_graph=12, input_dim=16):
    """Synthetic batched input AST: undirected chain per graph."""
    N = num_graphs * nodes_per_graph
    x = (0.1 * jax.random.normal(key, (N, input_dim))).astype(jnp.float32)

    src, dst, batch_ids = [], [], []
    for g in range(num_graphs):
        base = g * nodes_per_graph
        batch_ids.extend([g] * nodes_per_graph)
        for i in range(nodes_per_graph - 1):
            src += [base + i, base + i + 1]
            dst += [base + i + 1, base + i]
    src = jnp.array(src, dtype=jnp.int32)
    dst = jnp.array(dst, dtype=jnp.int32)
    batch_vec = jnp.array(batch_ids, dtype=jnp.int32)

    A = jnp.zeros((N, N), jnp.float32).at[dst, src].add(1.0)
    a_hat = _sym_norm(A)

    onehot = (batch_vec[None, :] == jnp.arange(num_graphs)[:, None]).astype(jnp.float32)
    pool = onehot / onehot.sum(axis=1, keepdims=True)   # global_mean_pool as dense [B, N]
    return x, a_hat, pool


def build_decoder_structure(batch_size, num_nodes):
    """ASTDecoder's fixed edge pattern: each node i connects to i+1, i+2 (both dirs)."""
    edges, batch_ids = [], []
    for b in range(batch_size):
        for i in range(num_nodes):
            for j in range(i + 1, min(i + 3, num_nodes)):
                edges.append((b * num_nodes + i, b * num_nodes + j))
                edges.append((b * num_nodes + j, b * num_nodes + i))
        batch_ids.extend([b] * num_nodes)

    N = batch_size * num_nodes
    src = jnp.array([e[0] for e in edges], dtype=jnp.int32)
    dst = jnp.array([e[1] for e in edges], dtype=jnp.int32)
    A = jnp.zeros((N, N), jnp.float32).at[dst, src].add(1.0)
    a_hat = _sym_norm(A)

    batch = jnp.array(batch_ids, dtype=jnp.int32)
    expand = (batch[:, None] == jnp.arange(batch_size)[None, :]).astype(jnp.float32)
    edge_index = jnp.stack([src, dst], axis=0)   # [2, E], matches torch layout
    return a_hat, expand, edge_index, batch


# ----------------------------------------------------------------------------
# Main
# ----------------------------------------------------------------------------

if __name__ == "__main__":
    key = jax.random.PRNGKey(0)
    k_param, k_graph = jax.random.split(key)

    INPUT_DIM = 16        # encoder_input_dim
    HIDDEN = 64           # hidden_dim (== decoder embedding_dim)
    OUT_NODE_DIM = 16     # node_output_dim
    NUM_GRAPHS = 2
    NODES_PER_GRAPH = 12

    params = init_params(k_param, input_dim=INPUT_DIM, hidden_dim=HIDDEN,
                         node_output_dim=OUT_NODE_DIM)
    x, a_enc, pool = build_encoder_graph(k_graph, NUM_GRAPHS, NODES_PER_GRAPH, INPUT_DIM)

    # target_num_nodes = counts[0] of data.batch (all graphs same size here)
    target_nodes = NODES_PER_GRAPH
    a_dec, expand, edge_index, dec_batch = build_decoder_structure(NUM_GRAPHS, target_nodes)

    operands = pack_operands(params, x, a_enc, pool, a_dec, expand)

    embedding, node_features = ast_autoencoder_forward(
        *operands, num_graphs=NUM_GRAPHS, num_nodes=target_nodes,
        hidden=HIDDEN, out_dim=OUT_NODE_DIM)
    jax.block_until_ready((embedding, node_features))

    result = {
        "embedding": embedding,
        "reconstruction": {
            "node_features": node_features,
            "edge_index": edge_index,
            "batch": dec_batch,
            "num_nodes_per_graph": [target_nodes] * NUM_GRAPHS,
        },
    }

    assert result["embedding"].shape == (NUM_GRAPHS, HIDDEN)
    assert result["reconstruction"]["node_features"].shape == (
        NUM_GRAPHS, target_nodes, OUT_NODE_DIM)
    assert result["reconstruction"]["edge_index"].shape[0] == 2
    assert result["reconstruction"]["batch"].shape == (NUM_GRAPHS * target_nodes,)
    assert jnp.all(jnp.isfinite(result["embedding"]))
    assert jnp.all(jnp.isfinite(result["reconstruction"]["node_features"]))
    print("KERNEL_OK")
</pallas_src>

<mosaic_0001>
module attributes {stable_mosaic.version = 11 : i64} {
  func.func @ast_autoencoder_kernel(%arg0: memref<24x64xbf16, #tpu.memory_space<vmem>>, %arg1: memref<2x24x24xbf16, #tpu.memory_space<vmem>>, %arg2: memref<2x24xbf16, #tpu.memory_space<vmem>>, %arg3: memref<24x2xf32, #tpu.memory_space<vmem>>, %arg4: memref<7x64x64xbf16, #tpu.memory_space<vmem>>, %arg5: memref<8x64xf32, #tpu.memory_space<vmem>>, %arg6: memref<32x128xf32, #tpu.memory_space<vmem>>) attributes {dimension_semantics = [], scalar_prefetch = 0 : i64, scratch_operands = 0 : i64, tpu.core_type = #tpu.core_type<tc>} {
    %c0 = arith.constant 0 : index
    %c0_0 = arith.constant 0 : index
    %c0_1 = arith.constant 0 : index
    %0 = vector.load %arg1[%c0, %c0_0, %c0_1] : memref<2x24x24xbf16, #tpu.memory_space<vmem>>, vector<1x24x24xbf16>
    %1 = vector.shape_cast %0 : vector<1x24x24xbf16> to vector<24x24xbf16>
    %c1 = arith.constant 1 : index
    %c0_2 = arith.constant 0 : index
    %c0_3 = arith.constant 0 : index
    %2 = vector.load %arg1[%c1, %c0_2, %c0_3] : memref<2x24x24xbf16, #tpu.memory_space<vmem>>, vector<1x24x24xbf16>
    %3 = vector.shape_cast %2 : vector<1x24x24xbf16> to vector<24x24xbf16>
    %c0_4 = arith.constant 0 : index
    %c0_5 = arith.constant 0 : index
    %4 = vector.load %arg0[%c0_4, %c0_5] : memref<24x64xbf16, #tpu.memory_space<vmem>>, vector<24x64xbf16>
    %c0_6 = arith.constant 0 : index
    %c0_7 = arith.constant 0 : index
    %c0_8 = arith.constant 0 : index
    %5 = vector.load %arg4[%c0_6, %c0_7, %c0_8] : memref<7x64x64xbf16, #tpu.memory_space<vmem>>, vector<1x64x64xbf16>
    %6 = vector.shape_cast %5 : vector<1x64x64xbf16> to vector<64x64xbf16>
    %cst = arith.constant dense<0.000000e+00> : vector<24x64xf32>
    %7 = tpu.matmul %4, %6, %cst {dimension_numbers = #tpu.dot_dimension_numbers<[1], [0], [0], [1], [0, 0, 1, 1], [], []>} : vector<24x64xbf16>, vector<64x64xbf16>, vector<24x64xf32> -> vector<24x64xf32>
    %8 = arith.truncf %7 : vector<24x64xf32> to vector<24x64xbf16>
    %cst_9 = arith.constant dense<0.000000e+00> : vector<24x64xf32>
    %9 = tpu.matmul %1, %8, %cst_9 {dimension_numbers = #tpu.dot_dimension_numbers<[1], [0], [0], [1], [0, 0, 1, 1], [], []>} : vector<24x24xbf16>, vector<24x64xbf16>, vector<24x64xf32> -> vector<24x64xf32>
    %c0_10 = arith.constant 0 : index
    %c0_11 = arith.constant 0 : index
    %10 = vector.load %arg5[%c0_10, %c0_11] : memref<8x64xf32, #tpu.memory_space<vmem>>, vector<1x64xf32>
    %11 = vector.broadcast %10 : vector<1x64xf32> to vector<24x64xf32>
    %12 = arith.addf %9, %11 : vector<24x64xf32>
    %cst_12 = arith.constant 0.000000e+00 : f32
    %13 = vector.broadcast %cst_12 : f32 to vector<24x64xf32>
    %14 = arith.maximumf %12, %13 : vector<24x64xf32>
    %15 = arith.truncf %14 : vector<24x64xf32> to vector<24x64xbf16>
    %c1_13 = arith.constant 1 : index
    %c0_14 = arith.constant 0 : index
    %c0_15 = arith.constant 0 : index
    %16 = vector.load %arg4[%c1_13, %c0_14, %c0_15] : memref<7x64x64xbf16, #tpu.memory_space<vmem>>, vector<1x64x64xbf16>
    %17 = vector.shape_cast %16 : vector<1x64x64xbf16> to vector<64x64xbf16>
    %cst_16 = arith.constant dense<0.000000e+00> : vector<24x64xf32>
    %18 = tpu.matmul %15, %17, %cst_16 {dimension_numbers = #tpu.dot_dimension_numbers<[1], [0], [0], [1], [0, 0, 1, 1], [], []>} : vector<24x64xbf16>, vector<64x64xbf16>, vector<24x64xf32> -> vector<24x64xf32>
    %19 = arith.truncf %18 : vector<24x64xf32> to vector<24x64xbf16>
    %cst_17 = arith.constant dense<0.000000e+00> : vector<24x64xf32>
    %20 = tpu.matmul %1, %19, %cst_17 {dimension_numbers = #tpu.dot_dimension_numbers<[1], [0], [0], [1], [0, 0, 1, 1], [], []>} : vector<24x24xbf16>, vector<24x64xbf16>, vector<24x64xf32> -> vector<24x64xf32>
    %c1_18 = arith.constant 1 : index
    %c0_19 = arith.constant 0 : index
    %21 = vector.load %arg5[%c1_18, %c0_19] : memref<8x64xf32, #tpu.memory_space<vmem>>, vector<1x64xf32>
    %22 = vector.broadcast %21 : vector<1x64xf32> to vector<24x64xf32>
    %23 = arith.addf %20, %22 : vector<24x64xf32>
    %cst_20 = arith.constant 0.000000e+00 : f32
    %24 = vector.broadcast %cst_20 : f32 to vector<24x64xf32>
    %25 = arith.maximumf %23, %24 : vector<24x64xf32>
    %26 = arith.truncf %25 : vector<24x64xf32> to vector<24x64xbf16>
    %c2 = arith.constant 2 : index
    %c0_21 = arith.constant 0 : index
    %c0_22 = arith.constant 0 : index
    %27 = vector.load %arg4[%c2, %c0_21, %c0_22] : memref<7x64x64xbf16, #tpu.memory_space<vmem>>, vector<1x64x64xbf16>
    %28 = vector.shape_cast %27 : vector<1x64x64xbf16> to vector<64x64xbf16>
    %cst_23 = arith.constant dense<0.000000e+00> : vector<24x64xf32>
    %29 = tpu.matmul %26, %28, %cst_23 {dimension_numbers = #tpu.dot_dimension_numbers<[1], [0], [0], [1], [0, 0, 1, 1], [], []>} : vector<24x64xbf16>, vector<64x64xbf16>, vector<24x64xf32> -> vector<24x64xf32>
    %c0_24 = arith.constant 0 : index
    %c0_25 = arith.constant 0 : index
    %30 = vector.load %arg2[%c0_24, %c0_25] : memref<2x24xbf16, #tpu.memory_space<vmem>>, vector<2x24xbf16>
    %31 = arith.truncf %29 : vector<24x64xf32> to vector<24x64xbf16>
    %cst_26 = arith.constant dense<0.000000e+00> : vector<2x64xf32>
    %32 = tpu.matmul %30, %31, %cst_26 {dimension_numbers = #tpu.dot_dimension_numbers<[1], [0], [0], [1], [0, 0, 1, 1], [], []>} : vector<2x24xbf16>, vector<24x64xbf16>, vector<2x64xf32> -> vector<2x64xf32>
    %c2_27 = arith.constant 2 : index
    %c0_28 = arith.constant 0 : index
    %33 = vector.load %arg5[%c2_27, %c0_28] : memref<8x64xf32, #tpu.memory_space<vmem>>, vector<1x64xf32>
    %34 = vector.broadcast %33 : vector<1x64xf32> to vector<2x64xf32>
    %35 = arith.addf %32, %34 : vector<2x64xf32>
    %36 = arith.truncf %35 : vector<2x64xf32> to vector<2x64xbf16>
    %c3 = arith.constant 3 : index
    %c0_29 = arith.constant 0 : index
    %c0_30 = arith.constant 0 : index
    %37 = vector.load %arg4[%c3, %c0_29, %c0_30] : memref<7x64x64xbf16, #tpu.memory_space<vmem>>, vector<1x64x64xbf16>
    %38 = vector.shape_cast %37 : vector<1x64x64xbf16> to vector<64x64xbf16>
    %cst_31 = arith.constant dense<0.000000e+00> : vector<2x64xf32>
    %39 = tpu.matmul %36, %38, %cst_31 {dimension_numbers = #tpu.dot_dimension_numbers<[1], [0], [0], [1], [0, 0, 1, 1], [], []>} : vector<2x64xbf16>, vector<64x64xbf16>, vector<2x64xf32> -> vector<2x64xf32>
    %c3_32 = arith.constant 3 : index
    %c0_33 = arith.constant 0 : index
    %40 = vector.load %arg5[%c3_32, %c0_33] : memref<8x64xf32, #tpu.memory_space<vmem>>, vector<1x64xf32>
    %41 = vector.broadcast %40 : vector<1x64xf32> to vector<2x64xf32>
    %42 = arith.addf %39, %41 : vector<2x64xf32>
    %c0_34 = arith.constant 0 : index
    %c0_35 = arith.constant 0 : index
    %43 = vector.load %arg3[%c0_34, %c0_35] : memref<24x2xf32, #tpu.memory_space<vmem>>, vector<24x2xf32>
    %44 = vector.extract_strided_slice %43 {offsets = [0, 0], sizes = [24, 1], strides = [1, 1]} : vector<24x2xf32> to vector<24x1xf32>
    %45 = vector.extract_strided_slice %42 {offsets = [0, 0], sizes = [1, 64], strides = [1, 1]} : vector<2x64xf32> to vector<1x64xf32>
    %46 = vector.broadcast %44 : vector<24x1xf32> to vector<24x64xf32>
    %47 = vector.broadcast %45 : vector<1x64xf32> to vector<24x64xf32>
    %48 = arith.mulf %46, %47 : vector<24x64xf32>
    %49 = vector.extract_strided_slice %43 {offsets = [0, 1], sizes = [24, 1], strides = [1, 1]} : vector<24x2xf32> to vector<24x1xf32>
    %50 = vector.extract_strided_slice %42 {offsets = [1, 0], sizes = [1, 64], strides = [1, 1]} : vector<2x64xf32> to vector<1x64xf32>
    %51 = vector.broadcast %49 : vector<24x1xf32> to vector<24x64xf32>
    %52 = vector.broadcast %50 : vector<1x64xf32> to vector<24x64xf32>
    %53 = arith.mulf %51, %52 : vector<24x64xf32>
    %54 = arith.addf %48, %53 : vector<24x64xf32>
    %c4 = arith.constant 4 : index
    %c0_36 = arith.constant 0 : index
    %55 = vector.load %arg5[%c4, %c0_36] : memref<8x64xf32, #tpu.memory_space<vmem>>, vector<1x64xf32>
    %56 = vector.broadcast %55 : vector<1x64xf32> to vector<24x64xf32>
    %57 = arith.addf %54, %56 : vector<24x64xf32>
    %cst_37 = arith.constant 0.000000e+00 : f32
    %58 = vector.broadcast %cst_37 : f32 to vector<24x64xf32>
    %59 = arith.maximumf %57, %58 : vector<24x64xf32>
    %60 = arith.truncf %59 : vector<24x64xf32> to vector<24x64xbf16>
    %c4_38 = arith.constant 4 : index
    %c0_39 = arith.constant 0 : index
    %c0_40 = arith.constant 0 : index
    %61 = vector.load %arg4[%c4_38, %c0_39, %c0_40] : memref<7x64x64xbf16, #tpu.memory_space<vmem>>, vector<1x64x64xbf16>
    %62 = vector.shape_cast %61 : vector<1x64x64xbf16> to vector<64x64xbf16>
    %cst_41 = arith.constant dense<0.000000e+00> : vector<24x64xf32>
    %63 = tpu.matmul %60, %62, %cst_41 {dimension_numbers = #tpu.dot_dimension_numbers<[1], [0], [0], [1], [0, 0, 1, 1], [], []>} : vector<24x64xbf16>, vector<64x64xbf16>, vector<24x64xf32> -> vector<24x64xf32>
    %64 = arith.truncf %63 : vector<24x64xf32> to vector<24x64xbf16>
    %cst_42 = arith.constant dense<0.000000e+00> : vector<24x64xf32>
    %65 = tpu.matmul %3, %64, %cst_42 {dimension_numbers = #tpu.dot_dimension_numbers<[1], [0], [0], [1], [0, 0, 1, 1], [], []>} : vector<24x24xbf16>, vector<24x64xbf16>, vector<24x64xf32> -> vector<24x64xf32>
    %c5 = arith.constant 5 : index
    %c0_43 = arith.constant 0 : index
    %66 = vector.load %arg5[%c5, %c0_43] : memref<8x64xf32, #tpu.memory_space<vmem>>, vector<1x64xf32>
    %67 = vector.broadcast %66 : vector<1x64xf32> to vector<24x64xf32>
    %68 = arith.addf %65, %67 : vector<24x64xf32>
    %cst_44 = arith.constant 0.000000e+00 : f32
    %69 = vector.broadcast %cst_44 : f32 to vector<24x64xf32>
    %70 = arith.maximumf %68, %69 : vector<24x64xf32>
    %71 = arith.truncf %70 : vector<24x64xf32> to vector<24x64xbf16>
    %c5_45 = arith.constant 5 : index
    %c0_46 = arith.constant 0 : index
    %c0_47 = arith.constant 0 : index
    %72 = vector.load %arg4[%c5_45, %c0_46, %c0_47] : memref<7x64x64xbf16, #tpu.memory_space<vmem>>, vector<1x64x64xbf16>
    %73 = vector.shape_cast %72 : vector<1x64x64xbf16> to vector<64x64xbf16>
    %cst_48 = arith.constant dense<0.000000e+00> : vector<24x64xf32>
    %74 = tpu.matmul %71, %73, %cst_48 {dimension_numbers = #tpu.dot_dimension_numbers<[1], [0], [0], [1], [0, 0, 1, 1], [], []>} : vector<24x64xbf16>, vector<64x64xbf16>, vector<24x64xf32> -> vector<24x64xf32>
    %75 = arith.truncf %74 : vector<24x64xf32> to vector<24x64xbf16>
    %cst_49 = arith.constant dense<0.000000e+00> : vector<24x64xf32>
    %76 = tpu.matmul %3, %75, %cst_49 {dimension_numbers = #tpu.dot_dimension_numbers<[1], [0], [0], [1], [0, 0, 1, 1], [], []>} : vector<24x24xbf16>, vector<24x64xbf16>, vector<24x64xf32> -> vector<24x64xf32>
    %c6 = arith.constant 6 : index
    %c0_50 = arith.constant 0 : index
    %77 = vector.load %arg5[%c6, %c0_50] : memref<8x64xf32, #tpu.memory_space<vmem>>, vector<1x64xf32>
    %78 = vector.broadcast %77 : vector<1x64xf32> to vector<24x64xf32>
    %79 = arith.addf %76, %78 : vector<24x64xf32>
    %cst_51 = arith.constant 0.000000e+00 : f32
    %80 = vector.broadcast %cst_51 : f32 to vector<24x64xf32>
    %81 = arith.maximumf %79, %80 : vector<24x64xf32>
    %82 = arith.truncf %81 : vector<24x64xf32> to vector<24x64xbf16>
    %c6_52 = arith.constant 6 : index
    %c0_53 = arith.constant 0 : index
    %c0_54 = arith.constant 0 : index
    %83 = vector.load %arg4[%c6_52, %c0_53, %c0_54] : memref<7x64x64xbf16, #tpu.memory_space<vmem>>, vector<1x64x64xbf16>
    %84 = vector.shape_cast %83 : vector<1x64x64xbf16> to vector<64x64xbf16>
    %cst_55 = arith.constant dense<0.000000e+00> : vector<24x64xf32>
    %85 = tpu.matmul %82, %84, %cst_55 {dimension_numbers = #tpu.dot_dimension_numbers<[1], [0], [0], [1], [0, 0, 1, 1], [], []>} : vector<24x64xbf16>, vector<64x64xbf16>, vector<24x64xf32> -> vector<24x64xf32>
    %c7 = arith.constant 7 : index
    %c0_56 = arith.constant 0 : index
    %86 = vector.load %arg5[%c7, %c0_56] : memref<8x64xf32, #tpu.memory_space<vmem>>, vector<1x64xf32>
    %87 = vector.broadcast %86 : vector<1x64xf32> to vector<24x64xf32>
    %88 = arith.addf %85, %87 : vector<24x64xf32>
    %cst_57 = arith.constant 0.000000e+00 : f32
    %89 = vector.broadcast %cst_57 : f32 to vector<6x64xf32>
    %90 = tpu.concatenate %35, %89, %88 in 0 : vector<2x64xf32>, vector<6x64xf32>, vector<24x64xf32> -> vector<32x64xf32>
    %cst_58 = arith.constant 0.000000e+00 : f32
    %91 = vector.broadcast %cst_58 : f32 to vector<32x64xf32>
    %92 = tpu.concatenate %90, %91 in 1 : vector<32x64xf32>, vector<32x64xf32> -> vector<32x128xf32>
    %c0_59 = arith.constant 0 : index
    %c0_60 = arith.constant 0 : index
    %93 = vector.load %arg6[%c0_59, %c0_60] : memref<32x128xf32, #tpu.memory_space<vmem>>, vector<32x128xf32>
    tpu.vector_store %arg6[%c0_59, %c0_60], %92 {strides = array<i32>} : memref<32x128xf32, #tpu.memory_space<vmem>>, vector<32x128xf32>,
    return
  }
}

</mosaic_0001>

<bundles_post_ra>
// kernel: ast_autoencoder_forward.1
= control target key start
LH: loop header
LB: loop body
LE: loop exit
PB: predicated region body
PF: predicated region fallthrough
CT: control target
= control target key end

     0   :  { %11 = vsyncpa [#allocation3], 0  ;;  %s1603_s0 = inlined_call_operand.hbm [shape: bf16[24,64], index: 0, kind: input, shape index: {}]   ;;  %s1604_s1 = inlined_call_operand.vmem [shape: bf16[2,24,24], index: 1, kind: input, shape index: {}]   ;;  %s1605_s2 = inlined_call_operand.vmem [shape: bf16[2,24], index: 2, kind: input, shape index: {}]   ;;  %s1606_s3 = inlined_call_operand.vmem [shape: f32[24,2], index: 3, kind: input, shape index: {}]   ;;  %s1607_s4 = inlined_call_operand.hbm [shape: bf16[7,64,64], index: 4, kind: input, shape index: {}]   ;;  %s1608_s5 = inlined_call_operand.vmem [shape: f32[8,64], index: 5, kind: input, shape index: {}]   ;;  %s1609_s6 = inlined_call_operand.vmem [shape: f32[32,128], index: 6, kind: output, shape index: {}]  }
   0x1   :  { %12 = vsyncpa [#allocation5], 0  ;;  %s1439_s21 = smov [#allocation2]   ;;  %s1391_s25 = scalar_lea.hbm %s1603_s0, 192 }
   0x2   :  { %s18_s22 = sshll.u32 %s1439_s21, 4  ;;  %p1392_p0 = scmp.ne.s32.totalorder %s1603_s0, %s1391_s25  ;;  %s19_s22 = int_to_ptr.vmem [resolvable:$true] %s18_s22 }
   0x3   :  { %p1395_p1 = scmp.lt.u32.totalorder %s1391_s25, %s1603_s0 }
   0x5   :  { %p1397_p2 = pnand %p1395_p1, %p1392_p0 }
   0x7   :  { %1400 = shalt.err (!%p1397_p2)
}
   0x8   :  { %s1401_s30 = scalar_lea.vmem %s19_s22, 192  ;;  %p1406_p4 = scmp.lt.s32.totalorder %s19_s22, %s19_s22 }
   0x9   :  { %p1402_p3 = scmp.ne.s32.totalorder %s19_s22, %s1401_s30  ;;  %p1407_p5 = scmp.lt.s32.totalorder %s1401_s30, %s1401_s30 }
   0xb   :  { %p1408_p6 = por %p1407_p5, %p1406_p4 }
   0xd   :  { %p1409_p7 = pnand %p1408_p6, %p1402_p3 }
   0xf   :  { %1412 = shalt.err (!%p1409_p7)
}
  0x10   :  { %s1440_s7 = smov 64   ;;  %s1441_s8 = smov 4  }
  0x11   :  { %24 = dma.hbm_to_vmem [thread:$0]  %s1603_s0, 192, %s19_s22, [#allocation3], %s1440_s7, %s1440_s7, %s1441_s8  }
  0x12   :  { %s1442_s11 = smov [#allocation4]   ;;  %s1413_s15 = scalar_lea.hbm %s1607_s4, 3584 }
  0x13   :  { %s36_s12 = sshll.u32 %s1442_s11, 4  ;;  %p1414_p8 = scmp.ne.s32.totalorder %s1607_s4, %s1413_s15  ;;  %s37_s12 = int_to_ptr.vmem [resolvable:$true] %s36_s12 }
  0x14   :  { %p1417_p9 = scmp.lt.u32.totalorder %s1413_s15, %s1607_s4 }
  0x16   :  { %p1419_p10 = pnand %p1417_p9, %p1414_p8 }
  0x18   :  { %1422 = shalt.err (!%p1419_p10)
}
  0x19   :  { %s1423_s20 = scalar_lea.vmem %s37_s12, 3584  ;;  %p1428_p12 = scmp.lt.s32.totalorder %s37_s12, %s37_s12 }
  0x1a   :  { %p1424_p11 = scmp.ne.s32.totalorder %s37_s12, %s1423_s20  ;;  %p1429_p13 = scmp.lt.s32.totalorder %s1423_s20, %s1423_s20 }
  0x1c   :  { %p1430_p0 = por %p1429_p13, %p1428_p12 }
  0x1e   :  { %p1431_p1 = pnand %p1430_p0, %p1424_p11 }
  0x20   :  { %1434 = shalt.err (!%p1431_p1)
}
  0x21   :  { %42 = dma.hbm_to_vmem [thread:$0]  %s1607_s4, 3584, %s37_s12, [#allocation5], %s1440_s7, %s1440_s7, %s1441_s8  }
  0x22   :  { %1435 = dma.done.wait [#allocation3], 192  }
  0x23   :  { %1436 = vsyncadd [#allocation3], 4294967104 }
  0x24   :  { %1437 = dma.done.wait [#allocation5], 3584  }
  0x25   :  { %1438 = vsyncadd [#allocation5], 4294963712  ;;  %v1357_v0 = vld [vmem:[#allocation4] sm:$0xff]   ;;  %v1358_v1 = vld [vmem:[#allocation4 + $0x8] sm:$0xff]   ;;  %vm102_vm0 = vcmask 523264   ;;  %vm172_vm1 = vcmask 195584  }
  0x26   :  { %1218 = vmatprep.subr.bf16.mxu0 %v1357_v0  ;;  %v1359_v2 = vld [vmem:[#allocation4 + $0x10] sm:$0xff]   ;;  %v1360_v4 = vld [vmem:[#allocation4 + $0x18] sm:$0xff]   ;;  %vm179_vm2 = vcmask 1043456   ;;  %v1365_v13 = vld [vmem:[#allocation4 + $0x20] sm:$0xff]   ;;  %v1443_v56 = vmov 0.0   ;;  %vm1444_vm3 = vmmov 0  }
  0x27   :  { %1219 = vmatpush3.bf16.msra.mxu0 %v1357_v0  ;;  %v1361_v3 = vld [vmem:[#allocation2] sm:$0xff]   ;;  %v1362_v5 = vld [vmem:[#allocation2 + $0x8] ss:$0 sps:$4 sm:$0xff]   ;;  %v1366_v16 = vld [vmem:[#allocation4 + $0x28] sm:$0xff]   ;;  %vm1075_vm4 = vcmask 1041408  }
  0x28   :  { %1220 = vmatprep.subr.bf16.mxu0 %v1358_v1  ;;  %1226 = vmatprep.mubr.msk.bf16.mxu0 %vm102_vm0, %v1361_v3  ;;  %v1363_v6 = vld [vmem:[%s1604_s1] sm:$0xff]   ;;  %v1364_v15 = vld [vmem:[%s1604_s1 + $0x8] ss:$0 sps:$4 sm:$0xff]   ;;  %v1369_v38 = vld [vmem:[#allocation4 + $0x40] sm:$0xff]  }
  0x29   :  { %1234 = vmatprep.mubr.msk.bf16.mxu1 %vm172_vm1, %v1363_v6  ;;  %v1367_v17 = vld [vmem:[#allocation4 + $0x30] sm:$0xff]   ;;  %v1368_v18 = vld [vmem:[#allocation4 + $0x38] sm:$0xff]   ;;  %v1370_v40 = vld [vmem:[#allocation4 + $0x48] sm:$0xff]  }
  0x2a   :  { %v1102_v19 = vld [vmem:[%s1608_s5] ss:$0 sm:$0xff]  ;;  %v1372_v42 = vld [vmem:[#allocation4 + $0x58] sm:$0xff]   ;;  %v1113_v43 = vld [vmem:[%s1608_s5 + $0x1] ss:$0 sm:$0xff] }
  0x2b   :  { %1221 = vmatpush3.bf16.msra.mxu0 %v1358_v1  ;;  %v1371_v41 = vld [vmem:[#allocation4 + $0x50] sm:$0xff]   ;;  %v1373_v1 = vld [vmem:[#allocation4 + $0x60] sm:$0xff]  }
  0x2c   :  { %1222 = vmatprep.subr.bf16.mxu0 %v1359_v2  ;;  %v473_v0 = vld [vmem:[%s1605_s2] sm:$0x1] }
  0x2d   :  { %v1375_v3 = vld [vmem:[#allocation4 + $0x70] sm:$0xff]  }
  0x2f   :  { %1223 = vmatpush3.bf16.msra.mxu0 %v1359_v2  ;;  %v1374_v2 = vld [vmem:[#allocation4 + $0x68] sm:$0xff]  }
  0x30   :  { %1224 = vmatprep.subr.bf16.mxu0 %v1360_v4 }
  0x33   :  { %1225 = vmatpush3.bf16.msra.mxu0 %v1360_v4  ;;  %v1376_v4 = vld [vmem:[#allocation4 + $0x78] sm:$0xff]  }
  0x36   :  { %1227 = vmatmul.mubr.msk.bf16.vlgmr.msra.gmra.mrb[0].mxu0 %vm102_vm0, %v1362_v5  ;;  %v609_v5 = vld [vmem:[%s1606_s3] sm:$0xff] }
  0x37   :  { %1254 = vmatprep.mubr.msk.bf16.mxu0 %vm172_vm1, %v1363_v6  ;;  %v1445_v6 = vmov 1  }
  0x38   :  { %1355 = vset.pattern.permute.xlu1 %v1445_v6 }
  0x39   :  { %635 = vperm.xlu1 %1355, %v609_v5  }
 0x109   :  { %v1228_v7 = vpop.f32.mrb[0].mxu0 }
 0x10a   :  { %v143_v8 = vpop.f32.mrb[1].mxu0  ;;  %v158_v12 = vpack.c.bf16 %v1228_v7, %v1228_v7  ;;  %v1446_v7 = vmov 0  }
 0x10b   :  { %v1229_v9 = vpop.f32.mrb[2].mxu0  ;;  %1354 = vset.pattern.permute.xlu0 %v1446_v7  ;;  %v1386_v7 = vld [vmem:[#allocation4 + $0xb8] sm:$0xff]  }
 0x10c   :  { %v146_v10 = vpop.f32.mrb[3].mxu0  ;;  %v181_v14 = vsel %vm179_vm2, %v158_v12, 0  ;;  %614 = vperm.xlu0 %1354, %v609_v5   ;;  %v611_v9 = vld [vmem:[%s1606_s3 + $0x10] sm:$0xff] }
 0x10d   :  { %v157_v11 = vpack.c.bf16 %v146_v10, %v143_v8  ;;  %v610_v8 = vld [vmem:[%s1606_s3 + $0x8] sm:$0xff]  ;;  %v1122_v10 = vld [vmem:[%s1608_s5 + $0x2] ss:$0 sm:$0xff]  ;;  %v1382_v5 = vld [vmem:[%s1604_s1 + $0x14] ss:$0 sps:$4 sm:$0xff]  }
 0x10e   :  { %639 = vperm.xlu1 %1355, %v610_v8  }
 0x10f   :  { %1230 = vmatprep.subr.bf16.mxu1 %v157_v11 }
 0x110   :  { %1231 = vmatpush3.bf16.msra.mxu1 %v157_v11  ;;  %619 = vperm.xlu0 %1354, %v610_v8   ;;  %v1137_v8 = vld [vmem:[%s1608_s5 + $0x5] ss:$0 sm:$0xff] }
 0x111   :  { %1342 = vmatprep.subr.msk.bf16.mxu1 %vm179_vm2, %v158_v12 }
 0x112   :  { %643 = vperm.xlu1 %1355, %v611_v9  }
 0x114   :  { %1233 = vmatpush3.bf16.msra.mxu1 %v181_v14  ;;  %624 = vperm.xlu0 %1354, %v611_v9  }
 0x115   :  { %1238 = vmatprep.subr.bf16.mxu1 %v1365_v13 }
 0x117   :  { %1235 = vmatmul.mubr.msk.bf16.vlgmr.msra.gmra.mrb[0].mxu1 %vm172_vm1, %v1364_v15 }
 0x118   :  { %1239 = vmatpush3.bf16.msra.mxu1 %v1365_v13  ;;  %1356 = vset.pattern.permute.xlu0 %v1445_v6  ;;  %v1385_v6 = vld [vmem:[#allocation4 + $0xb0] sm:$0xff]  }
 0x119   :  { %1240 = vmatprep.subr.bf16.mxu1 %v1366_v16 }
 0x11c   :  { %1241 = vmatpush3.bf16.msra.mxu1 %v1366_v16 }
 0x11d   :  { %1242 = vmatprep.subr.bf16.mxu1 %v1367_v17 }
 0x120   :  { %1243 = vmatpush3.bf16.msra.mxu1 %v1367_v17 }
 0x121   :  { %1244 = vmatprep.subr.bf16.mxu1 %v1368_v18 }
 0x124   :  { %1245 = vmatpush3.bf16.msra.mxu1 %v1368_v18 }
 0x125   :  { %1270 = vmatprep.subr.bf16.mxu1 %v1443_v56 }
 0x1ea   :  { %v1236_v20 = vpop.f32.mrb[0].mxu1 }
 0x1eb   :  { %v226_v21 = vadd.f32 %v1236_v20, %v1102_v19  ;;  %v217_v22 = vpop.f32.mrb[1].mxu1  ;;  %v1378_v20 = vld [vmem:[#allocation4 + $0x88] sm:$0xff]  }
 0x1ec   :  { %v218_v23 = vadd.f32 %v1102_v19, %v217_v22  ;;  %v1237_v24 = vpop.f32.mrb[2].mxu1  ;;  %v1380_v22 = vld [vmem:[#allocation4 + $0x98] sm:$0xff]  }
 0x1ed   :  { %v220_v25 = vpop.f32.mrb[3].mxu1  ;;  %v233_v27 = vmax.f32 %v226_v21, 0.0  ;;  %v1379_v21 = vld [vmem:[#allocation4 + $0x90] sm:$0xff]   ;;  %v615_v24 = vpop.permute.xlu0 %614 }
 0x1ee   :  { %v221_v26 = vadd.f32 %v1102_v19, %v220_v25  ;;  %v231_v28 = vmax.f32 %v218_v23, 0.0  ;;  %v1377_v19 = vld [vmem:[#allocation4 + $0x80] sm:$0xff]   ;;  %v627_v23 = vlaneseq  ;;  %v636_v25 = vpop.permute.xlu1 %635 }
 0x1ef   :  { %v235_v31 = vpack.c.bf16 %v233_v27, %v233_v27 }
 0x1f0   :  { %v232_v29 = vmax.f32 %v221_v26, 0.0  ;;  %v628_v26 = vshrl.u32 %v627_v23, 7 }
 0x1f1   :  { %v620_v27 = vpop.permute.xlu0 %619 }
 0x1f2   :  { %v234_v30 = vpack.c.bf16 %v232_v29, %v231_v28  ;;  %v1124_v28 = vld [vmem:[%s1608_s5 + $0x3] ss:$0 sm:$0xff]  ;;  %v640_v29 = vpop.permute.xlu1 %639 }
 0x1f4   :  { %1246 = vmatprep.mubr.msk.bf16.mxu1 %vm102_vm0, %v234_v30  ;;  %v629_v30 = vsub.s32 0, %v628_v26 }
 0x1f5   :  { %1247 = vmatmul.mubr.msk.bf16.vlgmr.msra.gmra.mrb[4].mxu1 %vm102_vm0, %v235_v31  ;;  %v648_v31 = vsub.s32 1, %v628_v26 }
 0x1f6   :  { %1274 = vmatprep.mubr.msk.bf16.mxu1 %vm1444_vm3, %v1443_v56 }
 0x2c8   :  { %v1248_v32 = vpop.f32.mrb[4].mxu1 }
 0x2c9   :  { %v309_v33 = vpop.f32.mrb[5].mxu1  ;;  %v324_v37 = vpack.c.bf16 %v1248_v32, %v1248_v32 }
 0x2ca   :  { %v1249_v34 = vpop.f32.mrb[6].mxu1 }
 0x2cb   :  { %v312_v35 = vpop.f32.mrb[7].mxu1  ;;  %v331_v39 = vsel %vm179_vm2, %v324_v37, 0 }
 0x2cc   :  { %v323_v36 = vpack.c.bf16 %v312_v35, %v309_v33 }
 0x2ce   :  { %1250 = vmatprep.subr.bf16.mxu0 %v323_v36 }
 0x2cf   :  { %1251 = vmatpush3.bf16.msra.mxu0 %v323_v36 }
 0x2d0   :  { %1343 = vmatprep.subr.msk.bf16.mxu0 %vm179_vm2, %v324_v37 }
 0x2d3   :  { %1253 = vmatpush3.bf16.msra.mxu0 %v331_v39  ;;  %v625_v39 = vpop.permute.xlu0 %624 }
 0x2d4   :  { %1258 = vmatprep.subr.bf16.mxu0 %v1369_v38 }
 0x2d6   :  { %1255 = vmatmul.mubr.msk.bf16.vlgmr.msra.gmra.mrb[4].mxu0 %vm172_vm1, %v1364_v15 }
 0x2d7   :  { %1259 = vmatpush3.bf16.msra.mxu0 %v1369_v38 }
 0x2d8   :  { %1260 = vmatprep.subr.bf16.mxu0 %v1370_v40 }
 0x2db   :  { %1261 = vmatpush3.bf16.msra.mxu0 %v1370_v40  ;;  %v644_v40 = vpop.permute.xlu1 %643 }
 0x2dc   :  { %1262 = vmatprep.subr.bf16.mxu0 %v1371_v41 }
 0x2df   :  { %1263 = vmatpush3.bf16.msra.mxu0 %v1371_v41 }
 0x2e0   :  { %1264 = vmatprep.subr.bf16.mxu0 %v1372_v42 }
 0x2e3   :  { %1265 = vmatpush3.bf16.msra.mxu0 %v1372_v42 }
 0x2e4   :  { %1290 = vmatprep.subr.bf16.mxu0 %v1377_v19 }
 0x3a9   :  { %v1256_v44 = vpop.f32.mrb[4].mxu0 }
 0x3aa   :  { %v376_v45 = vadd.f32 %v1256_v44, %v1113_v43  ;;  %v367_v46 = vpop.f32.mrb[5].mxu0 }
 0x3ab   :  { %v368_v47 = vadd.f32 %v1113_v43, %v367_v46  ;;  %v1257_v48 = vpop.f32.mrb[6].mxu0 }
 0x3ac   :  { %v370_v49 = vpop.f32.mrb[7].mxu0  ;;  %v383_v51 = vmax.f32 %v376_v45, 0.0 }
 0x3ad   :  { %v371_v50 = vadd.f32 %v1113_v43, %v370_v49  ;;  %v381_v52 = vmax.f32 %v368_v47, 0.0  ;;  %v1130_v47 = vld [vmem:[%s1608_s5 + $0x4] ss:$0 sm:$0xff] }
 0x3ae   :  { %v385_v55 = vpack.c.bf16 %v383_v51, %v383_v51 }
 0x3af   :  { %v382_v53 = vmax.f32 %v371_v50, 0.0 }
 0x3b1   :  { %v384_v54 = vpack.c.bf16 %v382_v53, %v381_v52 }
 0x3b3   :  { %1266 = vmatprep.mubr.msk.bf16.mxu0 %vm102_vm0, %v384_v54 }
 0x3b4   :  { %1267 = vmatmul.mubr.msk.bf16.vlgmr.msra.gmra.mrb[8].mxu0 %vm102_vm0, %v385_v55 }
 0x3b5   :  { %1291 = vmatpush3.bf16.msra.mxu0 %v1377_v19 }
 0x3b6   :  { %1292 = vmatprep.subr.bf16.mxu0 %v1378_v20 }
 0x3b9   :  { %1293 = vmatpush3.bf16.msra.mxu0 %v1378_v20 }
 0x3ba   :  { %1294 = vmatprep.subr.bf16.mxu0 %v1379_v21 }
 0x3bd   :  { %1295 = vmatpush3.bf16.msra.mxu0 %v1379_v21 }
 0x3be   :  { %1296 = vmatprep.subr.bf16.mxu0 %v1380_v22 }
 0x3c1   :  { %1297 = vmatpush3.bf16.msra.mxu0 %v1380_v22 }
 0x487   :  { %v1268_v57 = vpop.f32.mrb[8].mxu0 }
 0x488   :  { %v459_v58 = vpop.f32.mrb[9].mxu0  ;;  %v475_v62 = vpack.c.bf16 %v1268_v57, %v1268_v57 }
 0x489   :  { %v1269_v59 = vpop.f32.mrb[10].mxu0 }
 0x48a   :  { %v462_v60 = vpop.f32.mrb[11].mxu0  ;;  %v485_v63 = vsel %vm179_vm2, %v475_v62, 0  ;;  %v1381_v59 = vld [vmem:[%s1604_s1 + $0xc] sm:$0xff]  }
 0x48b   :  { %v474_v61 = vpack.c.bf16 %v462_v60, %v459_v58  ;;  %v1383_v60 = vld [vmem:[#allocation4 + $0xa0] sm:$0xff]  }
 0x48c   :  { %1310 = vmatprep.subr.bf16.mxu0 %v1383_v60 }
 0x48d   :  { %1271 = vmatpush3.bf16.msra.mxu1 %v474_v61  ;;  %v1384_v61 = vld [vmem:[#allocation4 + $0xa8] sm:$0xff]  }
 0x48e   :  { %1272 = vmatprep.subr.bf16.mxu1 %v1443_v56 }
 0x491   :  { %1273 = vmatpush3.bf16.msra.mxu1 %v485_v63 }
 0x492   :  { %1278 = vmatprep.subr.bf16.mxu1 %v1443_v56 }
 0x494   :  { %1275 = vmatmul.mubr.msk.bf16.vlgmr.msra.gmra.mrb[8].mxu1 %vm172_vm1, %v473_v0 }
 0x495   :  { %1279 = vmatpush3.bf16.msra.mxu1 %v1373_v1  ;;  %1286 = vmatprep.mubr.msk.bf16.mxu1 %vm1444_vm3, %v1443_v56 }
 0x496   :  { %1280 = vmatprep.subr.bf16.mxu1 %v1443_v56 }
 0x499   :  { %1281 = vmatpush3.bf16.msra.mxu1 %v1374_v2 }
 0x49a   :  { %1282 = vmatprep.subr.bf16.mxu1 %v1443_v56 }
 0x49d   :  { %1283 = vmatpush3.bf16.msra.mxu1 %v1375_v3 }
 0x49e   :  { %1284 = vmatprep.subr.bf16.mxu1 %v1443_v56 }
 0x4a1   :  { %1285 = vmatpush3.bf16.msra.mxu1 %v1376_v4 }
 0x567   :  { %v521_v11 = vpop.f32.mrb[8].mxu1 }
 0x568   :  { %v522_v12 = vadd.f32 %v1122_v10, %v521_v11  ;;  %v1276_v13 = vpop.f32.mrb[9].mxu1 }
 0x569   :  { %v524_v14 = vpop.f32.mrb[10].mxu1 }
 0x56a   :  { %v527_v15 = vpack.c.bf16 %v522_v12, %v522_v12  ;;  %v1076_v16 = vsel %vm1075_vm4, %v522_v12, 0.0  ;;  %v1277_v17 = vpop.f32.mrb[11].mxu1 }
 0x56b   :  { %v1077_v18 = vsel %vm102_vm0, %v1076_v16, 0.0 }
 0x56c   :  { %1081 = vst [vmem:[%s1609_s6] sm:$0xff] %v1077_v18  ;;  %1287 = vmatmul.mubr.msk.bf16.vlgmr.msra.gmra.mrb[12].mxu1 %vm102_vm0, %v527_v15 }
 0x56d   :  { %1306 = vmatprep.mubr.msk.bf16.mxu1 %vm172_vm1, %v1381_v59 }
 0x63f   :  { %v603_v32 = vpop.f32.mrb[12].mxu1 }
 0x640   :  { %v604_v33 = vadd.f32 %v1124_v28, %v603_v32  ;;  %v1288_v34 = vpop.f32.mrb[13].mxu1  ;;  %v1148_v32 = vld [vmem:[%s1608_s5 + $0x6] ss:$0 sm:$0xff] }
 0x641   :  { %v606_v35 = vpop.f32.mrb[14].mxu1 }
 0x642   :  { %v630_v36 = vrot.slane %v604_v33, %v629_v30  ;;  %v649_v37 = vrot.slane %v604_v33, %v648_v31  ;;  %v1289_v38 = vpop.f32.mrb[15].mxu1  ;;  %v1389_v30 = vld [vmem:[#allocation4 + $0xd0] sm:$0xff]   ;;  %v1390_v31 = vld [vmem:[#allocation4 + $0xd8] sm:$0xff]  }
 0x644   :  { %v631_v41 = vmul.f32 %v630_v36, %v615_v24  ;;  %v632_v42 = vmul.f32 %v630_v36, %v620_v27  ;;  %v633_v43 = vmul.f32 %v630_v36, %v625_v39  ;;  %v650_v44 = vmul.f32 %v649_v37, %v636_v25  ;;  %v1387_v27 = vld [vmem:[#allocation4 + $0xc0] sm:$0xff]  }
 0x645   :  { %v651_v45 = vmul.f32 %v649_v37, %v640_v29  ;;  %v652_v46 = vmul.f32 %v649_v37, %v644_v40  ;;  %v1388_v29 = vld [vmem:[#allocation4 + $0xc8] sm:$0xff]  }
 0x646   :  { %v653_v48 = vadd.f32 %v650_v44, %v631_v41 }
 0x647   :  { %v654_v49 = vadd.f32 %v651_v45, %v632_v42  ;;  %v655_v50 = vadd.f32 %v652_v46, %v633_v43  ;;  %v1151_v45 = vld [vmem:[%s1608_s5 + $0x7] ss:$0 sm:$0xff] }
 0x648   :  { %v661_v51 = vadd.f32 %v1130_v47, %v653_v48 }
 0x649   :  { %v663_v52 = vadd.f32 %v1130_v47, %v655_v50  ;;  %v662_v53 = vadd.f32 %v1130_v47, %v654_v49 }
 0x64a   :  { %v664_v54 = vmax.f32 %v661_v51, 0.0 }
 0x64b   :  { %v666_v55 = vmax.f32 %v663_v52, 0.0  ;;  %v665_v56 = vmax.f32 %v662_v53, 0.0 }
 0x64d   :  { %v667_v57 = vpack.c.bf16 %v665_v56, %v664_v54  ;;  %v668_v58 = vpack.c.bf16 %v666_v55, %v666_v55 }
 0x64f   :  { %1298 = vmatprep.mubr.msk.bf16.mxu0 %vm102_vm0, %v667_v57 }
 0x650   :  { %1299 = vmatmul.mubr.msk.bf16.vlgmr.msra.gmra.mrb[12].mxu0 %vm102_vm0, %v668_v58 }
 0x651   :  { %1311 = vmatpush3.bf16.msra.mxu0 %v1383_v60 }
 0x652   :  { %1312 = vmatprep.subr.bf16.mxu0 %v1384_v61 }
 0x655   :  { %1313 = vmatpush3.bf16.msra.mxu0 %v1384_v61 }
 0x656   :  { %1314 = vmatprep.subr.bf16.mxu0 %v1385_v6 }
 0x659   :  { %1315 = vmatpush3.bf16.msra.mxu0 %v1385_v6 }
 0x65a   :  { %1316 = vmatprep.subr.bf16.mxu0 %v1386_v7 }
 0x65d   :  { %1317 = vmatpush3.bf16.msra.mxu0 %v1386_v7 }
 0x723   :  { %v1300_v62 = vpop.f32.mrb[12].mxu0 }
 0x724   :  { %v742_v63 = vpop.f32.mrb[13].mxu0  ;;  %v757_v3 = vpack.c.bf16 %v1300_v62, %v1300_v62 }
 0x725   :  { %v1301_v0 = vpop.f32.mrb[14].mxu0 }
 0x726   :  { %v745_v1 = vpop.f32.mrb[15].mxu0  ;;  %v778_v4 = vsel %vm179_vm2, %v757_v3, 0 }
 0x727   :  { %v756_v2 = vpack.c.bf16 %v745_v1, %v742_v63 }
 0x729   :  { %1302 = vmatprep.subr.bf16.mxu1 %v756_v2 }
 0x72a   :  { %1303 = vmatpush3.bf16.msra.mxu1 %v756_v2 }
 0x72b   :  { %1344 = vmatprep.subr.msk.bf16.mxu1 %vm179_vm2, %v757_v3 }
 0x72e   :  { %1305 = vmatpush3.bf16.msra.mxu1 %v778_v4 }
 0x731   :  { %1307 = vmatmul.mubr.msk.bf16.vlgmr.msra.gmra.mrb[16].mxu1 %vm172_vm1, %v1382_v5 }
 0x732   :  { %1326 = vmatprep.mubr.msk.bf16.mxu1 %vm172_vm1, %v1381_v59 }
 0x804   :  { %v1308_v9 = vpop.f32.mrb[16].mxu1 }
 0x805   :  { %v823_v10 = vadd.f32 %v1308_v9, %v1137_v8  ;;  %v814_v11 = vpop.f32.mrb[17].mxu1 }
 0x806   :  { %v815_v12 = vadd.f32 %v1137_v8, %v814_v11  ;;  %v1309_v13 = vpop.f32.mrb[18].mxu1 }
 0x807   :  { %v817_v14 = vpop.f32.mrb[19].mxu1  ;;  %v830_v16 = vmax.f32 %v823_v10, 0.0 }
 0x808   :  { %v818_v15 = vadd.f32 %v1137_v8, %v817_v14  ;;  %v828_v17 = vmax.f32 %v815_v12, 0.0 }
 0x809   :  { %v832_v20 = vpack.c.bf16 %v830_v16, %v830_v16 }
 0x80a   :  { %v829_v18 = vmax.f32 %v818_v15, 0.0 }
 0x80c   :  { %v831_v19 = vpack.c.bf16 %v829_v18, %v828_v17 }
 0x80e   :  { %1318 = vmatprep.mubr.msk.bf16.mxu0 %vm102_vm0, %v831_v19 }
 0x80f   :  { %1319 = vmatmul.mubr.msk.bf16.vlgmr.msra.gmra.mrb[16].mxu0 %vm102_vm0, %v832_v20 }
 0x8e2   :  { %v1320_v21 = vpop.f32.mrb[16].mxu0 }
 0x8e3   :  { %v906_v22 = vpop.f32.mrb[17].mxu0  ;;  %v921_v26 = vpack.c.bf16 %v1320_v21, %v1320_v21 }
 0x8e4   :  { %v1321_v23 = vpop.f32.mrb[18].mxu0 }
 0x8e5   :  { %v909_v24 = vpop.f32.mrb[19].mxu0  ;;  %v928_v28 = vsel %vm179_vm2, %v921_v26, 0 }
 0x8e6   :  { %v920_v25 = vpack.c.bf16 %v909_v24, %v906_v22 }
 0x8e8   :  { %1322 = vmatprep.subr.bf16.mxu1 %v920_v25 }
 0x8e9   :  { %1323 = vmatpush3.bf16.msra.mxu1 %v920_v25 }
 0x8ea   :  { %1345 = vmatprep.subr.msk.bf16.mxu1 %vm179_vm2, %v921_v26 }
 0x8ed   :  { %1325 = vmatpush3.bf16.msra.mxu1 %v928_v28 }
 0x8ee   :  { %1330 = vmatprep.subr.bf16.mxu1 %v1387_v27 }
 0x8f0   :  { %1327 = vmatmul.mubr.msk.bf16.vlgmr.msra.gmra.mrb[20].mxu1 %vm172_vm1, %v1382_v5 }
 0x8f1   :  { %1331 = vmatpush3.bf16.msra.mxu1 %v1387_v27 }
 0x8f2   :  { %1332 = vmatprep.subr.bf16.mxu1 %v1388_v29 }
 0x8f5   :  { %1333 = vmatpush3.bf16.msra.mxu1 %v1388_v29 }
 0x8f6   :  { %1334 = vmatprep.subr.bf16.mxu1 %v1389_v30 }
 0x8f9   :  { %1335 = vmatpush3.bf16.msra.mxu1 %v1389_v30 }
 0x8fa   :  { %1336 = vmatprep.subr.bf16.mxu1 %v1390_v31 }
 0x8fd   :  { %1337 = vmatpush3.bf16.msra.mxu1 %v1390_v31 }
 0x9c3   :  { %v1328_v33 = vpop.f32.mrb[20].mxu1 }
 0x9c4   :  { %v973_v34 = vadd.f32 %v1328_v33, %v1148_v32  ;;  %v964_v35 = vpop.f32.mrb[21].mxu1 }
 0x9c5   :  { %v965_v36 = vadd.f32 %v1148_v32, %v964_v35  ;;  %v1329_v37 = vpop.f32.mrb[22].mxu1 }
 0x9c6   :  { %v967_v38 = vpop.f32.mrb[23].mxu1  ;;  %v980_v40 = vmax.f32 %v973_v34, 0.0 }
 0x9c7   :  { %v968_v39 = vadd.f32 %v1148_v32, %v967_v38  ;;  %v978_v41 = vmax.f32 %v965_v36, 0.0 }
 0x9c8   :  { %v982_v44 = vpack.c.bf16 %v980_v40, %v980_v40 }
 0x9c9   :  { %v979_v42 = vmax.f32 %v968_v39, 0.0 }
 0x9cb   :  { %v981_v43 = vpack.c.bf16 %v979_v42, %v978_v41 }
 0x9cd   :  { %1338 = vmatprep.mubr.msk.bf16.mxu1 %vm102_vm0, %v981_v43 }
 0x9ce   :  { %1339 = vmatmul.mubr.msk.bf16.vlgmr.msra.gmra.mrb[24].mxu1 %vm102_vm0, %v982_v44 }
 0xaa1   :  { %v1340_v46 = vpop.f32.mrb[24].mxu1 }
 0xaa2   :  { %v1070_v47 = vadd.f32 %v1340_v46, %v1151_v45  ;;  %v1061_v48 = vpop.f32.mrb[25].mxu1 }
 0xaa3   :  { %v1062_v49 = vadd.f32 %v1151_v45, %v1061_v48  ;;  %v1341_v50 = vpop.f32.mrb[26].mxu1 }
 0xaa4   :  { %v1080_v51 = vsel %vm102_vm0, %v1070_v47, 0.0  ;;  %v1064_v52 = vpop.f32.mrb[27].mxu1 }
 0xaa5   :  { %1084 = vst [vmem:[%s1609_s6 + $0x18] sm:$0xff] %v1080_v51  ;;  %v1078_v53 = vsel %vm102_vm0, %v1062_v49, 0.0  ;;  %v1065_v54 = vadd.f32 %v1151_v45, %v1064_v52 }
 0xaa6   :  { %1082 = vst [vmem:[%s1609_s6 + $0x8] sm:$0xff] %v1078_v53 }
 0xaa7   :  { %v1079_v55 = vsel %vm102_vm0, %v1065_v54, 0.0 }
 0xaa8   :  { %1083 = vst [vmem:[%s1609_s6 + $0x10] sm:$0xff] %v1079_v55 }
 0xaa9   :  { %1089 = vsyncpa [#allocation3], 1 }
 0xaaa   :  { %1090 = vsyncpa [#allocation5], 1 }

</bundles_post_ra>
